<compile_context>
chip_gen: v7x
topology: tpu7x:2x2x1
jax: 0.10.0
libtpu: 0.0.40
codegen_flags: <defaults>
</compile_context>

<pallas_src>
import jax
import jax.numpy as jnp
from jax.experimental import pallas as pl
from jax.experimental.pallas import tpu as pltpu


# ----------------------------- helpers ---------------------------------------
def _vmem_ceiling_bytes():
    """~75% of physical VMEM; conservative fallback assumes v7x (64 MiB)."""
    phys = 64 * 1024 * 1024
    try:
        phys = int(pltpu.get_tpu_info().vmem_capacity_bytes)
    except Exception:
        pass
    return max(32 * 1024 * 1024, (phys * 3) // 4)


def _largest_divisor_leq(n, cap, prefer_multiple_of=None):
    """Largest divisor of n that is <= cap, preferring multiples of a value."""
    cap = max(1, min(n, cap))
    best = 1
    for d in range(cap, 0, -1):
        if n % d == 0:
            if best == 1:
                best = d
            if prefer_multiple_of is None or d % prefer_multiple_of == 0:
                return d
    return best


def _se_sigmoid_gate(avg, w1t, w2):
    """SE MLP + sigmoid, all on VPU/XLU/EUP (no MXU, no relayouts).

    avg: (Bb, C, 1) f32 channel means
    w1t: (C, Cr) f32 = torch conv1.weight.T
    w2 : (C, Cr) f32 = torch conv2.weight
    returns sigmoid gate, (Bb, C, 1) f32
    """
    # squeeze (1x1 conv C->Cr, no bias) + ReLU:  h[b,j] = relu(sum_c avg[b,c]*w1[j,c])
    h = jnp.maximum(jnp.sum(w1t[None, :, :] * avg, axis=1, keepdims=True), 0.0)  # (Bb,1,Cr)
    # excite (1x1 conv Cr->C, no bias):          z[b,c] = sum_j h[b,j]*w2[c,j]
    z = jnp.sum(w2[None, :, :] * h, axis=2, keepdims=True)                        # (Bb,C,1)
    # sigmoid: exp and approximate reciprocal both land on the EUP slot.
    return pl.reciprocal(1.0 + jnp.exp(-z), approx=True)


# ------------------------------- wrapper --------------------------------------
def channel_attention(x_nchw, w1, w2, *, block_target_bytes=4 * 1024 * 1024,
                      force_hw_tiling=False, hw_tile=None):
    """ChannelAttention forward.

    x_nchw: (B, C, H, W)  float32 or bfloat16
    w1    : (C // r, C)   torch Conv2d(C, C//r, 1, bias=False).weight[:, :, 0, 0]
    w2    : (C, C // r)   torch Conv2d(C//r, C, 1, bias=False).weight[:, :, 0, 0]
    """
    B, C, H, W = x_nchw.shape
    HW = H * W
    Cr = w1.shape[0]
    assert w1.shape == (Cr, C) and w2.shape == (C, Cr)

    x3 = x_nchw.reshape(B, C, HW)                    # free reshape; layout stays NCHW
    w1t = jnp.transpose(w1).astype(jnp.float32)      # (C, Cr), tiny one-off
    w2f = w2.astype(jnp.float32)                     # (C, Cr)

    itemsize = x3.dtype.itemsize
    per_image_bytes = C * HW * itemsize
    weight_bytes = 2 * C * Cr * 4
    slack = 2 * 1024 * 1024
    ceiling = _vmem_ceiling_bytes()
    inv_hw = 1.0 / float(HW)

    use_fused = (not force_hw_tiling) and (
        4 * per_image_bytes + weight_bytes + slack <= ceiling)

    if use_fused:
        # ------------------- fused single-call path --------------------------
        # Pack batch images per block up to ~block_target_bytes, but keep the
        # grid >= 2 steps when B >= 2 so both v7x TensorCores stay busy.
        max_pack = max(1, block_target_bytes // per_image_bytes)
        if B >= 2:
            max_pack = min(max_pack, B // 2)
        bblk = _largest_divisor_leq(B, max_pack)
        grid = (B // bblk,)
        block_bytes = bblk * per_image_bytes
        vmem_bytes = int(min(ceiling,
                             max(4 * block_bytes + weight_bytes + slack,
                                 32 * 1024 * 1024)))

        def fused_kernel(x_ref, w1t_ref, w2_ref, o_ref):
            # pooling: spatial sum per channel (lane reduce), f32 accumulate
            xsum = jnp.sum(x_ref[...].astype(jnp.float32), axis=2, keepdims=True)
            gate = _se_sigmoid_gate(xsum * inv_hw, w1t_ref[...], w2_ref[...])
            # TODO(synk): for very large blocks, chunk this multiply with a
            # fori_loop over sublane-row slabs to bound vreg pressure.
            o_ref[...] = (x_ref[...].astype(jnp.float32) * gate).astype(o_ref.dtype)

        out = pl.pallas_call(
            fused_kernel,
            grid=grid,
            in_specs=[
                pl.BlockSpec((bblk, C, HW), lambda b: (b, 0, 0)),
                pl.BlockSpec((C, Cr), lambda b: (0, 0)),
                pl.BlockSpec((C, Cr), lambda b: (0, 0)),
            ],
            out_specs=pl.BlockSpec((bblk, C, HW), lambda b: (b, 0, 0)),
            out_shape=jax.ShapeDtypeStruct((B, C, HW), x3.dtype),
            compiler_params=pltpu.CompilerParams(
                dimension_semantics=("parallel",),
                vmem_limit_bytes=vmem_bytes,
            ),
            cost_estimate=pl.CostEstimate(
                flops=3 * B * C * HW + 4 * B * C * Cr,
                transcendentals=2 * B * C,
                bytes_accessed=2 * B * C * HW * itemsize + weight_bytes,
            ),
        )(x3, w1t, w2f)
        return out.reshape(B, C, H, W)

    # ---------------- HW-tiled two-call path (large images / v7x VMEM) --------
    if hw_tile is None:
        target_lanes = max(128, block_target_bytes // max(1, C * itemsize))
        hw_tile = _largest_divisor_leq(HW, target_lanes, prefer_multiple_of=128)
    assert HW % hw_tile == 0, (HW, hw_tile)
    n_hw = HW // hw_tile
    tile_bytes = C * hw_tile * itemsize
    vmem_bytes = int(min(ceiling,
                         max(4 * tile_bytes + weight_bytes + slack,
                             32 * 1024 * 1024)))

    # Pass 1: pool over HW tiles (accumulator over "arbitrary" axis), then
    # SE MLP + sigmoid -> per-channel scales (B, C, 1) in f32.
    def pool_se_kernel(x_ref, w1t_ref, w2_ref, s_ref, acc_ref):
        t = pl.program_id(1)

        @pl.when(t == 0)
        def _init():
            acc_ref[...] = jnp.zeros_like(acc_ref)

        acc_ref[...] += jnp.sum(x_ref[...].astype(jnp.float32), axis=2, keepdims=True)

        @pl.when(t == pl.num_programs(1) - 1)
        def _finish():
            s_ref[...] = _se_sigmoid_gate(
                acc_ref[...] * inv_hw, w1t_ref[...], w2_ref[...]).astype(s_ref.dtype)

    scales = pl.pallas_call(
        pool_se_kernel,
        grid=(B, n_hw),
        in_specs=[
            pl.BlockSpec((1, C, hw_tile), lambda b, t: (b, 0, t)),
            pl.BlockSpec((C, Cr), lambda b, t: (0, 0)),
            pl.BlockSpec((C, Cr), lambda b, t: (0, 0)),
        ],
        out_specs=pl.BlockSpec((1, C, 1), lambda b, t: (b, 0, 0)),
        out_shape=jax.ShapeDtypeStruct((B, C, 1), jnp.float32),
        scratch_shapes=[pltpu.VMEM((1, C, 1), jnp.float32)],
        compiler_params=pltpu.CompilerParams(
            dimension_semantics=("parallel", "arbitrary"),
            vmem_limit_bytes=vmem_bytes,
        ),
        cost_estimate=pl.CostEstimate(
            flops=B * C * HW + 4 * B * C * Cr,
            transcendentals=2 * B * C,
            bytes_accessed=B * C * HW * itemsize + B * C * 4 + weight_bytes,
        ),
    )(x3, w1t, w2f)

    # Pass 2: lane-dense gating multiply, tiled over HW (fully parallel grid).
    def gate_kernel(x_ref, s_ref, o_ref):
        o_ref[...] = (x_ref[...].astype(jnp.float32) * s_ref[...]).astype(o_ref.dtype)

    out = pl.pallas_call(
        gate_kernel,
        grid=(B, n_hw),
        in_specs=[
            pl.BlockSpec((1, C, hw_tile), lambda b, t: (b, 0, t)),
            pl.BlockSpec((1, C, 1), lambda b, t: (b, 0, 0)),
        ],
        out_specs=pl.BlockSpec((1, C, hw_tile), lambda b, t: (b, 0, t)),
        out_shape=jax.ShapeDtypeStruct((B, C, HW), x3.dtype),
        compiler_params=pltpu.CompilerParams(
            dimension_semantics=("parallel", "parallel"),
            vmem_limit_bytes=vmem_bytes,
        ),
        cost_estimate=pl.CostEstimate(
            flops=B * C * HW,
            transcendentals=0,
            bytes_accessed=2 * B * C * HW * itemsize + B * C * 4,
        ),
    )(x3, scales)
    return out.reshape(B, C, H, W)


# --------------------------------- main ---------------------------------------
if __name__ == "__main__":
    B, C, H, W = 2, 128, 16, 16
    reduction = 16
    Cr = C // reduction

    key = jax.random.PRNGKey(0)
    kx, k1, k2 = jax.random.split(key, 3)
    x = jax.random.normal(kx, (B, C, H, W), jnp.float32)
    # Kaiming-like init; layouts match torch conv weights with the 1x1 kernel squeezed.
    w1 = jax.random.normal(k1, (Cr, C), jnp.float32) * (2.0 / C) ** 0.5
    w2 = jax.random.normal(k2, (C, Cr), jnp.float32) * (2.0 / Cr) ** 0.5

    # pure-JAX reference (same math as the PyTorch module)
    avg = jnp.mean(x, axis=(2, 3))                              # (B, C)
    h = jnp.maximum(avg @ w1.T, 0.0)                            # (B, Cr)
    z = h @ w2.T                                                # (B, C)
    ref = x * jax.nn.sigmoid(z)[:, :, None, None]

    # Tolerance relaxed vs pure f32 because the sigmoid uses the EUP
    # approximate reciprocal (pl.reciprocal(approx=True), ~1e-3 relative).
    tol = 2e-2

    fwd = jax.jit(channel_attention,
                  static_argnames=("block_target_bytes", "force_hw_tiling", "hw_tile"))

    # 1) fused single-call path (default)
    out = jax.block_until_ready(fwd(x, w1, w2))
    assert out.shape == (B, C, H, W), out.shape
    assert bool(jnp.all(jnp.isfinite(out)))
    err = float(jnp.max(jnp.abs(out - ref)))
    assert err < tol, f"fused path max abs error vs reference: {err}"

    # 2) HW-tiled two-call path (forced; exercises the v7x / large-image route)
    out_t = jax.block_until_ready(
        channel_attention(x, w1, w2, force_hw_tiling=True, hw_tile=128))
    err_t = float(jnp.max(jnp.abs(out_t - ref)))
    assert err_t < tol, f"tiled path max abs error vs reference: {err_t}"

    # 3) bf16 I/O path (arithmetic stays f32 inside the kernel)
    x_bf = x.astype(jnp.bfloat16)
    xf = x_bf.astype(jnp.float32)
    avg_bf = jnp.mean(xf, axis=(2, 3))
    h_bf = jnp.maximum(avg_bf @ w1.T, 0.0)
    z_bf = h_bf @ w2.T
    ref_bf = xf * jax.nn.sigmoid(z_bf)[:, :, None, None]
    out_bf = jax.block_until_ready(fwd(x_bf, w1, w2))
    err_bf = float(jnp.max(jnp.abs(out_bf.astype(jnp.float32) - ref_bf)))
    assert err_bf < 1e-1, f"bf16 path max abs error vs reference: {err_bf}"

    print("KERNEL_OK")
</pallas_src>

<mosaic_0001>
module attributes {stable_mosaic.version = 11 : i64} {
  func.func @fused_kernel(%arg0: i32, %arg1: memref<1x128x256xf32, #tpu.memory_space<vmem>>, %arg2: memref<128x8xf32, #tpu.memory_space<vmem>>, %arg3: memref<128x8xf32, #tpu.memory_space<vmem>>, %arg4: memref<1x128x256xf32, #tpu.memory_space<vmem>>) attributes {dimension_semantics = [#tpu.dimension_semantics<parallel>], iteration_bounds = array<i64: 2>, scalar_prefetch = 0 : i64, scratch_operands = 0 : i64, tpu.core_type = #tpu.core_type<tc>, window_params = [{transform_indices = @transform_0, window_bounds = array<i64: 1, 128, 256>}, {pipeline_mode = #tpu.pipeline_mode<synchronous>, transform_indices = @transform_1, window_bounds = array<i64: 128, 8>}, {pipeline_mode = #tpu.pipeline_mode<synchronous>, transform_indices = @transform_2, window_bounds = array<i64: 128, 8>}, {transform_indices = @transform_3, window_bounds = array<i64: 1, 128, 256>}]} {
    %c0 = arith.constant 0 : index
    %c0_0 = arith.constant 0 : index
    %c0_1 = arith.constant 0 : index
    %0 = vector.load %arg1[%c0, %c0_0, %c0_1] : memref<1x128x256xf32, #tpu.memory_space<vmem>>, vector<1x128x256xf32>
    %cst = arith.constant dense<0.000000e+00> : vector<1x128xf32>
    %1 = vector.multi_reduction <add>, %0, %cst [2] : vector<1x128x256xf32> to vector<1x128xf32>
    %2 = vector.shape_cast %1 : vector<1x128xf32> to vector<1x128x1xf32>
    %cst_2 = arith.constant 3.906250e-03 : f32
    %3 = vector.broadcast %cst_2 : f32 to vector<1x128x1xf32>
    %4 = arith.mulf %2, %3 : vector<1x128x1xf32>
    %c0_3 = arith.constant 0 : index
    %c0_4 = arith.constant 0 : index
    %5 = vector.load %arg2[%c0_3, %c0_4] : memref<128x8xf32, #tpu.memory_space<vmem>>, vector<128x8xf32>
    %c0_5 = arith.constant 0 : index
    %c0_6 = arith.constant 0 : index
    %6 = vector.load %arg3[%c0_5, %c0_6] : memref<128x8xf32, #tpu.memory_space<vmem>>, vector<128x8xf32>
    %7 = vector.shape_cast %5 : vector<128x8xf32> to vector<1x128x8xf32>
    %8 = vector.broadcast %4 : vector<1x128x1xf32> to vector<1x128x8xf32>
    %9 = arith.mulf %7, %8 : vector<1x128x8xf32>
    %cst_7 = arith.constant dense<0.000000e+00> : vector<1x8xf32>
    %10 = vector.multi_reduction <add>, %9, %cst_7 [1] : vector<1x128x8xf32> to vector<1x8xf32>
    %11 = vector.shape_cast %10 : vector<1x8xf32> to vector<1x1x8xf32>
    %cst_8 = arith.constant 0.000000e+00 : f32
    %12 = vector.broadcast %cst_8 : f32 to vector<1x1x8xf32>
    %13 = arith.maximumf %11, %12 : vector<1x1x8xf32>
    %14 = vector.shape_cast %6 : vector<128x8xf32> to vector<1x128x8xf32>
    %15 = vector.broadcast %13 : vector<1x1x8xf32> to vector<1x128x8xf32>
    %16 = arith.mulf %14, %15 : vector<1x128x8xf32>
    %cst_9 = arith.constant dense<0.000000e+00> : vector<1x128xf32>
    %17 = vector.multi_reduction <add>, %16, %cst_9 [2] : vector<1x128x8xf32> to vector<1x128xf32>
    %18 = vector.shape_cast %17 : vector<1x128xf32> to vector<1x128x1xf32>
    %cst_10 = arith.constant 0.000000e+00 : f32
    %19 = vector.broadcast %cst_10 : f32 to vector<1x128x1xf32>
    %20 = arith.subf %19, %18 : vector<1x128x1xf32>
    %21 = math.exp %20 : vector<1x128x1xf32>
    %cst_11 = arith.constant 1.000000e+00 : f32
    %22 = vector.broadcast %cst_11 : f32 to vector<1x128x1xf32>
    %23 = arith.addf %22, %21 : vector<1x128x1xf32>
    %24 = tpu.reciprocal %23 {approx = true} : vector<1x128x1xf32> -> vector<1x128x1xf32>
    %c0_12 = arith.constant 0 : index
    %c0_13 = arith.constant 0 : index
    %c0_14 = arith.constant 0 : index
    %25 = vector.load %arg1[%c0_12, %c0_13, %c0_14] : memref<1x128x256xf32, #tpu.memory_space<vmem>>, vector<1x128x256xf32>
    %26 = vector.broadcast %24 : vector<1x128x1xf32> to vector<1x128x256xf32>
    %27 = arith.mulf %25, %26 : vector<1x128x256xf32>
    %c0_15 = arith.constant 0 : index
    %c0_16 = arith.constant 0 : index
    %c0_17 = arith.constant 0 : index
    %28 = vector.load %arg4[%c0_15, %c0_16, %c0_17] : memref<1x128x256xf32, #tpu.memory_space<vmem>>, vector<1x128x256xf32>
    tpu.vector_store %arg4[%c0_15, %c0_16, %c0_17], %27 {strides = array<i32>} : memref<1x128x256xf32, #tpu.memory_space<vmem>>, vector<1x128x256xf32>,
    return
  }
  func.func @transform_0(%arg0: i32) -> (i32, i32, i32) {
    %c0_i32 = arith.constant 0 : i32
    %c0_i32_0 = arith.constant 0 : i32
    %c0_i32_1 = arith.constant 0 : i32
    return %arg0, %c0_i32, %c0_i32_0 : i32, i32, i32
  }
  func.func @transform_1(%arg0: i32) -> (i32, i32) {
    %c0_i32 = arith.constant 0 : i32
    %c0_i32_0 = arith.constant 0 : i32
    %c0_i32_1 = arith.constant 0 : i32
    return %c0_i32, %c0_i32_0 : i32, i32
  }
  func.func @transform_2(%arg0: i32) -> (i32, i32) {
    %c0_i32 = arith.constant 0 : i32
    %c0_i32_0 = arith.constant 0 : i32
    %c0_i32_1 = arith.constant 0 : i32
    return %c0_i32, %c0_i32_0 : i32, i32
  }
  func.func @transform_3(%arg0: i32) -> (i32, i32, i32) {
    %c0_i32 = arith.constant 0 : i32
    %c0_i32_0 = arith.constant 0 : i32
    %c0_i32_1 = arith.constant 0 : i32
    return %arg0, %c0_i32, %c0_i32_0 : i32, i32, i32
  }
}

</mosaic_0001>

<bundles_post_ra>
// kernel: channel_attention.1
= control target key start
LH: loop header
LB: loop body
LE: loop exit
PB: predicated region body
PF: predicated region fallthrough
CT: control target
= control target key end

     0   :  { %s730_s12 = smov 0   ;;  %s1078_s0 = inlined_call_operand.vmem [shape: f32[2,128,256], index: 0, kind: input, shape index: {}]   ;;  %s1079_s1 = inlined_call_operand.vmem [shape: f32[128,8], index: 1, kind: input, shape index: {}]   ;;  %s1080_s2 = inlined_call_operand.vmem [shape: f32[128,8], index: 2, kind: input, shape index: {}]   ;;  %s1081_s3 = inlined_call_operand.vmem [shape: f32[2,128,256], index: 3, kind: output, shape index: {}]  }
   0x1 LB: > { %s617_s13 = sadd.s32 4294967295, %s708_s12   ;;  %p621_p0 = scmp.ge.s32.totalorder %s708_s12, 1  ;;  %s708_s12 = sphi %s730_s12, %s13_s12  }
   0x2   : > { %p137_p1 = scmp.lt.s32.totalorder %s708_s12, 3 }
   0x4   : > { %p138_p2 = pnand %p621_p0, %p137_p1 }
   0x5   : > { %p161_p3 = scmp.lt.s32.totalorder (!%p138_p2), %s617_s13, 1  ;;  %v267_v51 = vld [vmem:[%s1079_s1] sm:$0xff] (!%p138_p2)  ;;  %v269_v53 = vld [vmem:[%s1079_s1 + $0x10] sm:$0xff] (!%p138_p2)  ;;  %v268_v54 = vld [vmem:[%s1079_s1 + $0x8] sm:$0xff] (!%p138_p2)  ;;  %vm315_vm0 = vcmask (!%p138_p2), 64512  }
   0x6   : > { %141 = sbr.rel (%p138_p2) target bundleno = 421 (0x1a5), region = 32  ;;  %v270_v58 = vld [vmem:[%s1079_s1 + $0x18] sm:$0xff] (!%p138_p2) }
   0xd   : > { %s1083_s13 = smov (!%p161_p3, %s617_s13), 1 }
   0xe   : > { %s628_s14 = sshll.u32 %s1083_s13, 8 }
   0xf   : > { %s746_s17 = scalar_lea.vmem %s1078_s0, %s628_s14  ;;  %s1009_s9 = scalar_lea.vmem %s1081_s3, %s628_s14 }
  0x10   : > { %v749_v0 = vld [vmem:[%s746_s17] sm:$0xff]  ;;  %v752_v1 = vld [vmem:[%s746_s17 + $0x8] sm:$0xff]  ;;  %v763_v5 = vld [vmem:[%s746_s17 + $0x10] sm:$0xff] }
  0x11   : > { %v755_v2 = vld [vmem:[%s746_s17 + $0x20] sm:$0xff]  ;;  %v203_v3 = vadd.f32 %v752_v1, %v749_v0  ;;  %v760_v4 = vld [vmem:[%s746_s17 + $0x28] sm:$0xff]  ;;  %v766_v6 = vld [vmem:[%s746_s17 + $0x18] sm:$0xff] }
  0x12   : > { %v209_v7 = vadd.f32 %v760_v4, %v755_v2  ;;  %v771_v8 = vld [vmem:[%s746_s17 + $0x30] sm:$0xff]  ;;  %v774_v9 = vld [vmem:[%s746_s17 + $0x38] sm:$0xff]  ;;  %v206_v10 = vadd.f32 %v766_v6, %v763_v5  ;;  %v781_v12 = vld [vmem:[%s746_s17 + $0x40] sm:$0xff] }
  0x13   : > { %204 = vadd.xlane.f32.xlu0 %v203_v3  ;;  %v212_v11 = vadd.f32 %v774_v9, %v771_v8  ;;  %v784_v13 = vld [vmem:[%s746_s17 + $0x48] sm:$0xff]  ;;  %v787_v14 = vld [vmem:[%s746_s17 + $0x50] sm:$0xff]  ;;  %v790_v15 = vld [vmem:[%s746_s17 + $0x58] sm:$0xff] }
  0x14   : > { %210 = vadd.xlane.f32.xlu1 %v209_v7  ;;  %v215_v16 = vadd.f32 %v784_v13, %v781_v12  ;;  %v218_v17 = vadd.f32 %v790_v15, %v787_v14  ;;  %v797_v18 = vld [vmem:[%s746_s17 + $0x60] sm:$0xff]  ;;  %v800_v19 = vld [vmem:[%s746_s17 + $0x68] sm:$0xff]  ;;  %v803_v20 = vld [vmem:[%s746_s17 + $0x70] sm:$0xff] }
  0x15   : > { %v806_v21 = vld [vmem:[%s746_s17 + $0x78] sm:$0xff]  ;;  %v221_v22 = vadd.f32 %v800_v19, %v797_v18  ;;  %v813_v24 = vld [vmem:[%s746_s17 + $0x80] sm:$0xff]  ;;  %v816_v25 = vld [vmem:[%s746_s17 + $0x88] sm:$0xff] }
  0x16   : > { %v224_v23 = vadd.f32 %v806_v21, %v803_v20  ;;  %v819_v26 = vld [vmem:[%s746_s17 + $0x90] sm:$0xff]  ;;  %v822_v27 = vld [vmem:[%s746_s17 + $0x98] sm:$0xff]  ;;  %v227_v28 = vadd.f32 %v816_v25, %v813_v24  ;;  %v829_v30 = vld [vmem:[%s746_s17 + $0xa0] sm:$0xff] }
  0x17   : > { %207 = vadd.xlane.f32.xlu0 %v206_v10  ;;  %v230_v29 = vadd.f32 %v822_v27, %v819_v26  ;;  %v832_v31 = vld [vmem:[%s746_s17 + $0xa8] sm:$0xff]  ;;  %v835_v32 = vld [vmem:[%s746_s17 + $0xb0] sm:$0xff]  ;;  %v838_v33 = vld [vmem:[%s746_s17 + $0xb8] sm:$0xff] }
  0x18   : > { %213 = vadd.xlane.f32.xlu1 %v212_v11  ;;  %v233_v34 = vadd.f32 %v832_v31, %v829_v30  ;;  %v236_v35 = vadd.f32 %v838_v33, %v835_v32  ;;  %v845_v36 = vld [vmem:[%s746_s17 + $0xc0] sm:$0xff]  ;;  %v848_v37 = vld [vmem:[%s746_s17 + $0xc8] sm:$0xff]  ;;  %v851_v38 = vld [vmem:[%s746_s17 + $0xd0] sm:$0xff] }
  0x19   : > { %v854_v39 = vld [vmem:[%s746_s17 + $0xd8] sm:$0xff]  ;;  %v239_v40 = vadd.f32 %v848_v37, %v845_v36  ;;  %v861_v42 = vld [vmem:[%s746_s17 + $0xe0] sm:$0xff]  ;;  %v864_v43 = vld [vmem:[%s746_s17 + $0xe8] sm:$0xff] }
  0x1a   : > { %v242_v41 = vadd.f32 %v854_v39, %v851_v38  ;;  %v867_v44 = vld [vmem:[%s746_s17 + $0xf0] sm:$0xff]  ;;  %v870_v45 = vld [vmem:[%s746_s17 + $0xf8] sm:$0xff]  ;;  %v245_v46 = vadd.f32 %v864_v43, %v861_v42  ;;  %v271_v3 = vld [vmem:[%s1079_s1 + $0x20] sm:$0xff] }
  0x1b   : > { %216 = vadd.xlane.f32.xlu0 %v215_v16  ;;  %v248_v47 = vadd.f32 %v870_v45, %v867_v44 }
  0x1c   : > { %219 = vadd.xlane.f32.xlu1 %v218_v17  ;;  %v272_v17 = vld [vmem:[%s1079_s1 + $0x28] sm:$0xff] }
  0x1f   : > { %222 = vadd.xlane.f32.xlu0 %v221_v22 }
  0x20   : > { %225 = vadd.xlane.f32.xlu1 %v224_v23 }
  0x23   : > { %228 = vadd.xlane.f32.xlu0 %v227_v28 }
  0x24   : > { %231 = vadd.xlane.f32.xlu1 %v230_v29 }
  0x27   : > { %234 = vadd.xlane.f32.xlu0 %v233_v34 }
  0x28   : > { %237 = vadd.xlane.f32.xlu1 %v236_v35 }
  0x2b   : > { %240 = vadd.xlane.f32.xlu0 %v239_v40 }
  0x2c   : > { %243 = vadd.xlane.f32.xlu1 %v242_v41 }
  0x2f   : > { %246 = vadd.xlane.f32.xlu0 %v245_v46  ;;  %v273_v46 = vld [vmem:[%s1079_s1 + $0x30] sm:$0xff] }
  0x30   : > { %249 = vadd.xlane.f32.xlu1 %v248_v47 }
  0xa0   : > { %v205_v48 = vpop.xlane.xlu0 %204 }
  0xa1   : > { %v251_v49 = vmul.f32 0.00390625, %v205_v48  ;;  %v211_v50 = vpop.xlane.xlu1 %210 }
  0xa2   : > { %v253_v52 = vmul.f32 0.00390625, %v211_v50  ;;  %v274_v50 = vld [vmem:[%s1079_s1 + $0x38] sm:$0xff] }
  0xa3   : > { %v299_v56 = vmul.f32 %v267_v51, %v251_v49 }
  0xa4   : > { %v208_v55 = vpop.xlane.xlu0 %207  ;;  %v301_v61 = vmul.f32 %v269_v53, %v253_v52 }
  0xa5   : > { %v252_v57 = vmul.f32 0.00390625, %v208_v55  ;;  %v214_v59 = vpop.xlane.xlu1 %213  ;;  %v316_v10 = vsel %vm315_vm0, %v299_v56, 0.0 }
  0xa6   : > { %v254_v60 = vmul.f32 0.00390625, %v214_v59  ;;  %v319_v29 = vsel %vm315_vm0, %v301_v61, 0.0 }
  0xa7   : > { %v300_v62 = vmul.f32 %v268_v54, %v252_v57 }
  0xa8   : > { %v302_v63 = vmul.f32 %v270_v58, %v254_v60  ;;  %v217_v7 = vpop.xlane.xlu0 %216  ;;  %v275_v58 = vld [vmem:[%s1079_s1 + $0x40] sm:$0xff] }
  0xa9   : > { %v317_v11 = vsel %vm315_vm0, %v300_v62, 0.0  ;;  %v255_v16 = vmul.f32 0.00390625, %v217_v7  ;;  %v220_v22 = vpop.xlane.xlu1 %219  ;;  %v276_v62 = vld [vmem:[%s1079_s1 + $0x48] sm:$0xff] }
  0xaa   : > { %v318_v23 = vadd.f32 %v317_v11, %v316_v10  ;;  %v256_v28 = vmul.f32 0.00390625, %v220_v22  ;;  %v321_v34 = vsel %vm315_vm0, %v302_v63, 0.0  ;;  %v277_v22 = vld [vmem:[%s1079_s1 + $0x50] sm:$0xff] }
  0xab   : > { %v303_v35 = vmul.f32 %v271_v3, %v255_v16 }
  0xac   : > { %v320_v40 = vadd.f32 %v319_v29, %v318_v23  ;;  %v304_v41 = vmul.f32 %v272_v17, %v256_v28  ;;  %v223_v47 = vpop.xlane.xlu0 %222 }
  0xad   : > { %v323_v48 = vsel %vm315_vm0, %v303_v35, 0.0  ;;  %v257_v49 = vmul.f32 0.00390625, %v223_v47  ;;  %v226_v51 = vpop.xlane.xlu1 %225 }
  0xae   : > { %v322_v52 = vadd.f32 %v321_v34, %v320_v40  ;;  %v258_v53 = vmul.f32 0.00390625, %v226_v51  ;;  %v325_v54 = vsel %vm315_vm0, %v304_v41, 0.0  ;;  %v278_v34 = vld [vmem:[%s1079_s1 + $0x58] sm:$0xff] }
  0xaf   : > { %v305_v55 = vmul.f32 %v273_v46, %v257_v49 }
  0xb0   : > { %v324_v56 = vadd.f32 %v323_v48, %v322_v52  ;;  %v306_v57 = vmul.f32 %v274_v50, %v258_v53  ;;  %v229_v59 = vpop.xlane.xlu0 %228  ;;  %v279_v50 = vld [vmem:[%s1079_s1 + $0x60] sm:$0xff] }
  0xb1   : > { %v327_v60 = vsel %vm315_vm0, %v305_v55, 0.0  ;;  %v259_v61 = vmul.f32 0.00390625, %v229_v59  ;;  %v232_v63 = vpop.xlane.xlu1 %231 }
  0xb2   : > { %v326_v3 = vadd.f32 %v325_v54, %v324_v56  ;;  %v260_v7 = vmul.f32 0.00390625, %v232_v63  ;;  %v329_v10 = vsel %vm315_vm0, %v306_v57, 0.0  ;;  %v280_v54 = vld [vmem:[%s1079_s1 + $0x68] sm:$0xff] }
  0xb3   : > { %v307_v11 = vmul.f32 %v275_v58, %v259_v61 }
  0xb4   : > { %v328_v16 = vadd.f32 %v327_v60, %v326_v3  ;;  %v308_v17 = vmul.f32 %v276_v62, %v260_v7  ;;  %v235_v23 = vpop.xlane.xlu0 %234  ;;  %v281_v62 = vld [vmem:[%s1079_s1 + $0x70] sm:$0xff] }
  0xb5   : > { %v331_v28 = vsel %vm315_vm0, %v307_v11, 0.0  ;;  %v261_v29 = vmul.f32 0.00390625, %v235_v23  ;;  %v238_v35 = vpop.xlane.xlu1 %237 }
  0xb6   : > { %v330_v40 = vadd.f32 %v329_v10, %v328_v16  ;;  %v262_v41 = vmul.f32 0.00390625, %v238_v35  ;;  %v333_v46 = vsel %vm315_vm0, %v308_v17, 0.0  ;;  %v282_v10 = vld [vmem:[%s1079_s1 + $0x78] sm:$0xff] }
  0xb7   : > { %v309_v47 = vmul.f32 %v277_v22, %v261_v29 }
  0xb8   : > { %v332_v48 = vadd.f32 %v331_v28, %v330_v40  ;;  %v310_v49 = vmul.f32 %v278_v34, %v262_v41  ;;  %v241_v51 = vpop.xlane.xlu0 %240 }
  0xb9   : > { %v335_v52 = vsel %vm315_vm0, %v309_v47, 0.0  ;;  %v263_v53 = vmul.f32 0.00390625, %v241_v51  ;;  %v244_v55 = vpop.xlane.xlu1 %243 }
  0xba   : > { %v334_v56 = vadd.f32 %v333_v46, %v332_v48  ;;  %v264_v57 = vmul.f32 0.00390625, %v244_v55  ;;  %v337_v58 = vsel %vm315_vm0, %v310_v49, 0.0 }
  0xbb   : > { %v311_v59 = vmul.f32 %v279_v50, %v263_v53  ;;  %v284_v53 = vld [vmem:[%s1080_s2 + $0x8] sm:$0xff] }
  0xbc   : > { %v336_v60 = vadd.f32 %v335_v52, %v334_v56  ;;  %v312_v61 = vmul.f32 %v280_v54, %v264_v57  ;;  %v247_v63 = vpop.xlane.xlu0 %246  ;;  %v283_v54 = vld [vmem:[%s1080_s2] sm:$0xff]  ;;  %v286_v56 = vld [vmem:[%s1080_s2 + $0x18] sm:$0xff]  ;;  %v285_v57 = vld [vmem:[%s1080_s2 + $0x10] sm:$0xff] }
  0xbd   : > { %v339_v3 = vsel %vm315_vm0, %v311_v59, 0.0  ;;  %v265_v7 = vmul.f32 0.00390625, %v247_v63  ;;  %v250_v11 = vpop.xlane.xlu1 %249 }
  0xbe   : > { %v338_v16 = vadd.f32 %v337_v58, %v336_v60  ;;  %v266_v17 = vmul.f32 0.00390625, %v250_v11  ;;  %v341_v22 = vsel %vm315_vm0, %v312_v61, 0.0 }
  0xbf   : > { %v313_v23 = vmul.f32 %v281_v62, %v265_v7  ;;  %v287_v7 = vld [vmem:[%s1080_s2 + $0x20] sm:$0xff] }
  0xc0   : > { %v340_v28 = vadd.f32 %v339_v3, %v338_v16  ;;  %v314_v29 = vmul.f32 %v282_v10, %v266_v17  ;;  %v288_v3 = vld [vmem:[%s1080_s2 + $0x28] sm:$0xff] }
  0xc1   : > { %v343_v34 = vsel %vm315_vm0, %v313_v23, 0.0  ;;  %v289_v23 = vld [vmem:[%s1080_s2 + $0x30] sm:$0xff] }
  0xc2   : > { %v342_v35 = vadd.f32 %v341_v22, %v340_v28  ;;  %v345_v40 = vsel %vm315_vm0, %v314_v29, 0.0  ;;  %v290_v22 = vld [vmem:[%s1080_s2 + $0x38] sm:$0xff] }
  0xc4   : > { %v344_v41 = vadd.f32 %v343_v34, %v342_v35 }
  0xc6   : > { %v346_v46 = vadd.f32 %v345_v40, %v344_v41  ;;  %v292_v40 = vld [vmem:[%s1080_s2 + $0x48] sm:$0xff]  ;;  %v291_v41 = vld [vmem:[%s1080_s2 + $0x40] sm:$0xff] }
  0xc8   : > { %v347_v47 = vrot.slane %v346_v46, 4 }
  0xca   : > { %v348_v48 = vadd.f32 %v347_v47, %v346_v46 }
  0xcc   : > { %v349_v49 = vrot.slane %v348_v48, 2 }
  0xce   : > { %v350_v50 = vadd.f32 %v349_v49, %v348_v48 }
  0xd0   : > { %v351_v51 = vrot.slane %v350_v50, 1 }
  0xd2   : > { %v352_v52 = vadd.f32 %v351_v51, %v350_v50  ;;  %v294_v50 = vld [vmem:[%s1080_s2 + $0x58] sm:$0xff]  ;;  %v293_v51 = vld [vmem:[%s1080_s2 + $0x50] sm:$0xff] }
  0xd4   : > { %v353_v55 = vmax.f32 %v352_v52, 0.0 }
  0xd6   : > { %v355_v58 = vmul.f32 %v353_v55, %v284_v53  ;;  %v354_v59 = vmul.f32 %v353_v55, %v283_v54  ;;  %v357_v62 = vmul.f32 %v353_v55, %v286_v56  ;;  %v356_v63 = vmul.f32 %v353_v55, %v285_v57  ;;  %v296_v57 = vld [vmem:[%s1080_s2 + $0x68] sm:$0xff] }
  0xd7   : > { %v359_v16 = vmul.f32 %v353_v55, %v288_v3  ;;  %v358_v17 = vmul.f32 %v353_v55, %v287_v7  ;;  %v361_v34 = vmul.f32 %v353_v55, %v290_v22  ;;  %v360_v35 = vmul.f32 %v353_v55, %v289_v23  ;;  %v297_v3 = vld [vmem:[%s1080_s2 + $0x70] sm:$0xff] }
  0xd8   : > { %v373_v60 = vsel %vm315_vm0, %v355_v58, 0.0  ;;  %v370_v61 = vsel %vm315_vm0, %v354_v59, 0.0  ;;  %v379_v10 = vsel %vm315_vm0, %v357_v62, 0.0  ;;  %v376_v11 = vsel %vm315_vm0, %v356_v63, 0.0  ;;  %v295_v58 = vld [vmem:[%s1080_s2 + $0x60] sm:$0xff]  ;;  %v298_v63 = vld [vmem:[%s1080_s2 + $0x78] sm:$0xff] }
  0xd9   : > { %374 = vadd.xlane.f32.xlu1 %v373_v60  ;;  %371 = vadd.xlane.f32.xlu0 %v370_v61  ;;  %v385_v28 = vsel %vm315_vm0, %v359_v16, 0.0  ;;  %v382_v29 = vsel %vm315_vm0, %v358_v17, 0.0  ;;  %v391_v46 = vsel %vm315_vm0, %v361_v34, 0.0  ;;  %v388_v47 = vsel %vm315_vm0, %v360_v35, 0.0 }
  0xda   : > { %v363_v48 = vmul.f32 %v353_v55, %v292_v40  ;;  %v362_v49 = vmul.f32 %v353_v55, %v291_v41  ;;  %v365_v54 = vmul.f32 %v353_v55, %v294_v50  ;;  %v364_v56 = vmul.f32 %v353_v55, %v293_v51 }
  0xdb   : > { %v367_v61 = vmul.f32 %v353_v55, %v296_v57  ;;  %v366_v62 = vmul.f32 %v353_v55, %v295_v58  ;;  %v368_v16 = vmul.f32 %v353_v55, %v297_v3 }
  0xdc   : > { %v397_v52 = vsel %vm315_vm0, %v363_v48, 0.0  ;;  %v394_v53 = vsel %vm315_vm0, %v362_v49, 0.0  ;;  %v403_v59 = vsel %vm315_vm0, %v365_v54, 0.0  ;;  %v400_v60 = vsel %vm315_vm0, %v364_v56, 0.0 }
  0xdd   : > { %380 = vadd.xlane.f32.xlu1 %v379_v10  ;;  %377 = vadd.xlane.f32.xlu0 %v376_v11  ;;  %v409_v7 = vsel %vm315_vm0, %v367_v61, 0.0  ;;  %v406_v10 = vsel %vm315_vm0, %v366_v62, 0.0  ;;  %v369_v11 = vmul.f32 %v353_v55, %v298_v63  ;;  %v412_v22 = vsel %vm315_vm0, %v368_v16, 0.0 }
  0xdf   : > { %v415_v17 = vsel %vm315_vm0, %v369_v11, 0.0 }
  0xe1   : > { %386 = vadd.xlane.f32.xlu1 %v385_v28  ;;  %383 = vadd.xlane.f32.xlu0 %v382_v29 }
  0xe5   : > { %392 = vadd.xlane.f32.xlu1 %v391_v46  ;;  %389 = vadd.xlane.f32.xlu0 %v388_v47 }
  0xe9   : > { %398 = vadd.xlane.f32.xlu1 %v397_v52  ;;  %395 = vadd.xlane.f32.xlu0 %v394_v53 }
  0xed   : > { %404 = vadd.xlane.f32.xlu1 %v403_v59  ;;  %401 = vadd.xlane.f32.xlu0 %v400_v60 }
  0xf1   : > { %410 = vadd.xlane.f32.xlu1 %v409_v7  ;;  %407 = vadd.xlane.f32.xlu0 %v406_v10 }
  0xf5   : > { %416 = vadd.xlane.f32.xlu1 %v415_v17  ;;  %413 = vadd.xlane.f32.xlu0 %v412_v22 }
 0x166   : > { %v375_v23 = vpop.xlane.xlu1 %374  ;;  %v372_v28 = vpop.xlane.xlu0 %371 }
 0x167   : > { %v419_v29 = vsub.f32 0.0, %v375_v23  ;;  %v418_v34 = vsub.f32 0.0, %v372_v28 }
 0x169   : > { %v436_v35 = vmul.f32 1.442695, %v419_v29  ;;  %v434_v40 = vmul.f32 1.442695, %v418_v34 }
 0x16a   : > { %v381_v41 = vpop.xlane.xlu1 %380  ;;  %v378_v46 = vpop.xlane.xlu0 %377 }
 0x16b   : > { %638 = vpow2.f32 %v436_v35  ;;  %v421_v47 = vsub.f32 0.0, %v381_v41  ;;  %v420_v48 = vsub.f32 0.0, %v378_v46 }
 0x16c   : > { %640 = vpow2.f32 %v434_v40 }
 0x16d   : > { %v440_v55 = vmul.f32 1.442695, %v421_v47  ;;  %v438_v49 = vmul.f32 1.442695, %v420_v48 }
 0x16e   : > { %v387_v50 = vpop.xlane.xlu1 %386  ;;  %v384_v51 = vpop.xlane.xlu0 %383 }
 0x16f   : > { %642 = vpow2.f32 %v440_v55  ;;  %v423_v52 = vsub.f32 0.0, %v387_v50  ;;  %v422_v53 = vsub.f32 0.0, %v384_v51 }
 0x170   : > { %644 = vpow2.f32 %v438_v49 }
 0x171   : > { %v444_v54 = vmul.f32 1.442695, %v423_v52  ;;  %v442_v56 = vmul.f32 1.442695, %v422_v53 }
 0x172   : > { %v393_v57 = vpop.xlane.xlu1 %392  ;;  %v390_v58 = vpop.xlane.xlu0 %389 }
 0x173   : > { %646 = vpow2.f32 %v444_v54  ;;  %v425_v59 = vsub.f32 0.0, %v393_v57  ;;  %v424_v60 = vsub.f32 0.0, %v390_v58 }
 0x174   : > { %648 = vpow2.f32 %v442_v56 }
 0x175   : > { %v639_v61 = vpop.eup %638  ;;  %v448_v62 = vmul.f32 1.442695, %v425_v59  ;;  %v446_v7 = vmul.f32 1.442695, %v424_v60 }
 0x176   : > { %v641_v63 = vpop.eup %640  ;;  %v467_v3 = vadd.f32 1.0, %v639_v61  ;;  %v399_v10 = vpop.xlane.xlu1 %398 }
 0x177   : > { %v396_v11 = vpop.xlane.xlu0 %395  ;;  %v466_v16 = vadd.f32 1.0, %v641_v63  ;;  %650 = vpow2.f32 %v448_v62  ;;  %v427_v17 = vsub.f32 0.0, %v399_v10 }
 0x178   : > { %v426_v22 = vsub.f32 0.0, %v396_v11  ;;  %652 = vrcp.f32 %v467_v3 }
 0x179   : > { %v643_v23 = vpop.eup %642  ;;  %654 = vrcp.f32 %v466_v16  ;;  %v452_v28 = vmul.f32 1.442695, %v427_v17 }
 0x17a   : > { %v645_v29 = vpop.eup %644  ;;  %v469_v34 = vadd.f32 1.0, %v643_v23  ;;  %656 = vpow2.f32 %v446_v7  ;;  %v450_v35 = vmul.f32 1.442695, %v426_v22  ;;  %v405_v40 = vpop.xlane.xlu1 %404 }
 0x17b   : > { %v402_v41 = vpop.xlane.xlu0 %401  ;;  %v468_v46 = vadd.f32 1.0, %v645_v29  ;;  %658 = vpow2.f32 %v452_v28  ;;  %v429_v47 = vsub.f32 0.0, %v405_v40 }
 0x17c   : > { %v428_v48 = vsub.f32 0.0, %v402_v41  ;;  %660 = vrcp.f32 %v469_v34 }
 0x17d   : > { %v647_v55 = vpop.eup %646  ;;  %662 = vrcp.f32 %v468_v46  ;;  %v456_v49 = vmul.f32 1.442695, %v429_v47 }
 0x17e   : > { %v649_v50 = vpop.eup %648  ;;  %v471_v51 = vadd.f32 1.0, %v647_v55  ;;  %664 = vpow2.f32 %v450_v35  ;;  %v454_v52 = vmul.f32 1.442695, %v428_v48  ;;  %v411_v53 = vpop.xlane.xlu1 %410 }
 0x17f   : > { %v408_v54 = vpop.xlane.xlu0 %407  ;;  %v470_v56 = vadd.f32 1.0, %v649_v50  ;;  %666 = vpow2.f32 %v456_v49  ;;  %v431_v57 = vsub.f32 0.0, %v411_v53 }
 0x180   : > { %v430_v58 = vsub.f32 0.0, %v408_v54  ;;  %668 = vrcp.f32 %v471_v51 }
 0x181   : > { %v651_v59 = vpop.eup %650  ;;  %670 = vrcp.f32 %v470_v56  ;;  %v460_v60 = vmul.f32 1.442695, %v431_v57 }
 0x182   : > { %v458_v61 = vmul.f32 1.442695, %v430_v58  ;;  %v653_v62 = vpop.eup %652  ;;  %v473_v63 = vadd.f32 1.0, %v651_v59  ;;  %672 = vpow2.f32 %v454_v52  ;;  %v417_v3 = vpop.xlane.xlu1 %416 }
 0x183   : > { %v414_v7 = vpop.xlane.xlu0 %413  ;;  %v655_v10 = vpop.eup %654  ;;  %v500_v11 = vmul.f32 %v653_v62, %v763_v5  ;;  %v501_v16 = vmul.f32 %v653_v62, %v766_v6  ;;  %674 = vpow2.f32 %v460_v60  ;;  %v433_v17 = vsub.f32 0.0, %v417_v3 }
 0x184   : > { %v657_v22 = vpop.eup %656  ;;  %v498_v23 = vmul.f32 %v655_v10, %v749_v0  ;;  %v499_v28 = vmul.f32 %v655_v10, %v752_v1  ;;  %676 = vrcp.f32 %v473_v63  ;;  %v432_v29 = vsub.f32 0.0, %v414_v7 }
 0x185   : > { %v659_v34 = vpop.eup %658  ;;  %532 = vst [vmem:[%s1009_s9 + $0x10] sm:$0xff] %v500_v11  ;;  %533 = vst [vmem:[%s1009_s9 + $0x18] sm:$0xff] %v501_v16  ;;  %v472_v35 = vadd.f32 1.0, %v657_v22  ;;  %678 = vpow2.f32 %v458_v61  ;;  %v464_v5 = vmul.f32 1.442695, %v433_v17 }
 0x186   : > { %v661_v40 = vpop.eup %660  ;;  %530 = vst [vmem:[%s1009_s9] sm:$0xff] %v498_v23  ;;  %531 = vst [vmem:[%s1009_s9 + $0x8] sm:$0xff] %v499_v28  ;;  %v475_v6 = vadd.f32 1.0, %v659_v34  ;;  %v462_v41 = vmul.f32 1.442695, %v432_v29 }
 0x187   : > { %v663_v0 = vpop.eup %662  ;;  %v504_v1 = vmul.f32 %v661_v40, %v771_v8  ;;  %v505_v46 = vmul.f32 %v661_v40, %v774_v9  ;;  %680 = vrcp.f32 %v472_v35 }
 0x188   : > { %v665_v47 = vpop.eup %664  ;;  %v502_v48 = vmul.f32 %v663_v0, %v755_v2  ;;  %v503_v55 = vmul.f32 %v663_v0, %v760_v4  ;;  %682 = vrcp.f32 %v475_v6 }
 0x189   : > { %v667_v49 = vpop.eup %666  ;;  %536 = vst [vmem:[%s1009_s9 + $0x30] sm:$0xff] %v504_v1  ;;  %537 = vst [vmem:[%s1009_s9 + $0x38] sm:$0xff] %v505_v46  ;;  %v474_v50 = vadd.f32 1.0, %v665_v47  ;;  %684 = vpow2.f32 %v464_v5 }
 0x18a   : > { %v669_v51 = vpop.eup %668  ;;  %534 = vst [vmem:[%s1009_s9 + $0x20] sm:$0xff] %v502_v48  ;;  %535 = vst [vmem:[%s1009_s9 + $0x28] sm:$0xff] %v503_v55  ;;  %v477_v8 = vadd.f32 1.0, %v667_v49  ;;  %686 = vpow2.f32 %v462_v41 }
 0x18b   : > { %v671_v9 = vpop.eup %670  ;;  %v508_v2 = vmul.f32 %v669_v51, %v787_v14  ;;  %v509_v4 = vmul.f32 %v669_v51, %v790_v15  ;;  %688 = vrcp.f32 %v474_v50 }
 0x18c   : > { %v673_v52 = vpop.eup %672  ;;  %v506_v53 = vmul.f32 %v671_v9, %v781_v12  ;;  %v507_v54 = vmul.f32 %v671_v9, %v784_v13  ;;  %690 = vrcp.f32 %v477_v8 }
 0x18d   : > { %v675_v56 = vpop.eup %674  ;;  %540 = vst [vmem:[%s1009_s9 + $0x50] sm:$0xff] %v508_v2  ;;  %541 = vst [vmem:[%s1009_s9 + $0x58] sm:$0xff] %v509_v4  ;;  %v476_v57 = vadd.f32 1.0, %v673_v52 }
 0x18e   : > { %v677_v58 = vpop.eup %676  ;;  %538 = vst [vmem:[%s1009_s9 + $0x40] sm:$0xff] %v506_v53  ;;  %539 = vst [vmem:[%s1009_s9 + $0x48] sm:$0xff] %v507_v54  ;;  %v479_v59 = vadd.f32 1.0, %v675_v56 }
 0x18f   : > { %v679_v14 = vpop.eup %678  ;;  %v512_v15 = vmul.f32 %v677_v58, %v803_v20  ;;  %v513_v60 = vmul.f32 %v677_v58, %v806_v21  ;;  %692 = vrcp.f32 %v476_v57 }
 0x190   : > { %694 = vrcp.f32 %v479_v59  ;;  %v478_v12 = vadd.f32 1.0, %v679_v14 }
 0x191   : > { %v681_v13 = vpop.eup %680  ;;  %544 = vst [vmem:[%s1009_s9 + $0x70] sm:$0xff] %v512_v15  ;;  %545 = vst [vmem:[%s1009_s9 + $0x78] sm:$0xff] %v513_v60 }
 0x192   : > { %v683_v61 = vpop.eup %682  ;;  %v510_v62 = vmul.f32 %v681_v13, %v797_v18  ;;  %v511_v63 = vmul.f32 %v681_v13, %v800_v19  ;;  %696 = vrcp.f32 %v478_v12 }
 0x193   : > { %v685_v3 = vpop.eup %684  ;;  %v516_v20 = vmul.f32 %v683_v61, %v819_v26  ;;  %v517_v21 = vmul.f32 %v683_v61, %v822_v27 }
 0x194   : > { %v687_v7 = vpop.eup %686  ;;  %542 = vst [vmem:[%s1009_s9 + $0x60] sm:$0xff] %v510_v62  ;;  %543 = vst [vmem:[%s1009_s9 + $0x68] sm:$0xff] %v511_v63  ;;  %v481_v10 = vadd.f32 1.0, %v685_v3 }
 0x195   : > { %v689_v11 = vpop.eup %688  ;;  %548 = vst [vmem:[%s1009_s9 + $0x90] sm:$0xff] %v516_v20  ;;  %549 = vst [vmem:[%s1009_s9 + $0x98] sm:$0xff] %v517_v21  ;;  %v480_v18 = vadd.f32 1.0, %v687_v7 }
 0x196   : > { %v691_v16 = vpop.eup %690  ;;  %v514_v19 = vmul.f32 %v689_v11, %v813_v24  ;;  %v515_v17 = vmul.f32 %v689_v11, %v816_v25  ;;  %698 = vrcp.f32 %v481_v10 }
 0x197   : > { %v520_v26 = vmul.f32 %v691_v16, %v835_v32  ;;  %v521_v27 = vmul.f32 %v691_v16, %v838_v33  ;;  %700 = vrcp.f32 %v480_v18 }
 0x198   : > { %546 = vst [vmem:[%s1009_s9 + $0x80] sm:$0xff] %v514_v19  ;;  %547 = vst [vmem:[%s1009_s9 + $0x88] sm:$0xff] %v515_v17 }
 0x199   : > { %v693_v22 = vpop.eup %692  ;;  %552 = vst [vmem:[%s1009_s9 + $0xb0] sm:$0xff] %v520_v26  ;;  %553 = vst [vmem:[%s1009_s9 + $0xb8] sm:$0xff] %v521_v27 }
 0x19a   : > { %v695_v24 = vpop.eup %694  ;;  %v518_v25 = vmul.f32 %v693_v22, %v829_v30  ;;  %v519_v23 = vmul.f32 %v693_v22, %v832_v31 }
 0x19b   : > { %v524_v28 = vmul.f32 %v695_v24, %v851_v38  ;;  %v525_v32 = vmul.f32 %v695_v24, %v854_v39 }
 0x19c   : > { %v697_v33 = vpop.eup %696  ;;  %550 = vst [vmem:[%s1009_s9 + $0xa0] sm:$0xff] %v518_v25  ;;  %551 = vst [vmem:[%s1009_s9 + $0xa8] sm:$0xff] %v519_v23 }
 0x19d   : > { %556 = vst [vmem:[%s1009_s9 + $0xd0] sm:$0xff] %v524_v28  ;;  %557 = vst [vmem:[%s1009_s9 + $0xd8] sm:$0xff] %v525_v32  ;;  %v522_v29 = vmul.f32 %v697_v33, %v845_v36  ;;  %v523_v34 = vmul.f32 %v697_v33, %v848_v37 }
 0x19f   : > { %554 = vst [vmem:[%s1009_s9 + $0xc0] sm:$0xff] %v522_v29  ;;  %555 = vst [vmem:[%s1009_s9 + $0xc8] sm:$0xff] %v523_v34 }
 0x1a0   : > { %v699_v30 = vpop.eup %698 }
 0x1a1   : > { %v701_v31 = vpop.eup %700  ;;  %v528_v38 = vmul.f32 %v699_v30, %v867_v44  ;;  %v529_v39 = vmul.f32 %v699_v30, %v870_v45 }
 0x1a2   : > { %v526_v35 = vmul.f32 %v701_v31, %v861_v42  ;;  %v527_v5 = vmul.f32 %v701_v31, %v864_v43 }
 0x1a3   : > { %560 = vst [vmem:[%s1009_s9 + $0xf0] sm:$0xff] %v528_v38  ;;  %561 = vst [vmem:[%s1009_s9 + $0xf8] sm:$0xff] %v529_v39 }
 0x1a4   : > { %558 = vst [vmem:[%s1009_s9 + $0xe0] sm:$0xff] %v526_v35  ;;  %559 = vst [vmem:[%s1009_s9 + $0xe8] sm:$0xff] %v527_v5 }
 0x1a5 PF: > { %s13_s12 = sadd.s32 1, %s708_s12  }
 0x1a6   : > { %p10_p4 = scmp.ge.s32.totalorder %s13_s12, 4  }
 0x1a8   :  { %12 = sbr.rel (!%p10_p4) target bundleno = 1 (0x1), region = 62 }

</bundles_post_ra>
